<compile_context>
chip_gen: v5e
topology: v5e:2x2
jax: 0.10.0
libtpu: 0.0.40
codegen_flags: <defaults>
</compile_context>

<pallas_src>
import math
from functools import partial

import jax
import jax.numpy as jnp
from jax import lax
from jax.experimental import pallas as pl
from jax.experimental.pallas import tpu as pltpu

LN_EPS = 1e-5
_NEG_INF = -1e30
_LANE = 128


# ---------------------------------------------------------------------------
# Generation-aware sizing helpers
# ---------------------------------------------------------------------------
def _vmem_capacity():
    try:
        return int(pltpu.get_tpu_info().vmem_capacity_bytes)
    except Exception:
        return 64 << 20                       # conservative (v7x per-TC VMEM)


def _vmem_limit(working_bytes, capacity):
    # >= 2x the estimated working set, <= ~85% of physical VMEM
    # (~108 MiB on 128-MiB v5e/v6e, ~54 MiB on 64-MiB v7x).
    hard_cap = int(capacity * 0.85)
    want = max(int(2 * working_bytes), 32 << 20)
    return min(want, hard_cap)


def _pick_tile(s, cap):
    """Largest sequence tile <= cap that divides S (multiple of 8 if tiled)."""
    if s <= cap:
        return s
    for t in (1024, 768, 512, 384, 256, 192, 128, 64, 32, 16, 8):
        if t <= cap and s % t == 0:
            return t
    return s


def _rep(shape):
    """Grid-constant (replicated) block."""
    return pl.BlockSpec(shape, lambda *_: (0,) * len(shape))


def _layer_norm(v, g, b):
    mu = jnp.mean(v, axis=-1, keepdims=True)
    var = jnp.mean((v - mu) * (v - mu), axis=-1, keepdims=True)
    return (v - mu) * lax.rsqrt(var + LN_EPS) * g + b


# ---------------------------------------------------------------------------
# Phase 1: LayerNorm_attn + fused QKV projection -> head-major Q/K/V
# ---------------------------------------------------------------------------
def _ln_qkv_kernel(x_ref, g_ref, b_ref, wqkv_ref, bqkv_ref,
                   q_ref, k_ref, v_ref, *, heads, dh):
    d = heads * dh
    x = x_ref[0].astype(jnp.float32)                        # (tS, D)
    a = _layer_norm(x, g_ref[0], b_ref[0])                  # f32
    qkv = jnp.dot(a.astype(jnp.bfloat16), wqkv_ref[...],    # bf16 x bf16 -> f32
                  preferred_element_type=jnp.float32) + bqkv_ref[0]
    qkv = qkv.astype(jnp.bfloat16)
    # Emit Q/K/V head-major directly (no XLA split/transpose HBM pass between
    # the two kernels).  Static lane slices + full-slab stores, hidden under
    # the (tS,D)x(D,3D) MXU matmul above.
    for h in range(heads):
        q_ref[0, h] = qkv[:, h * dh:(h + 1) * dh]
        k_ref[0, h] = qkv[:, d + h * dh:d + (h + 1) * dh]
        v_ref[0, h] = qkv[:, 2 * d + h * dh:2 * d + (h + 1) * dh]


# ---------------------------------------------------------------------------
# Phase 2: flash attention (online softmax over KV tiles) + out-proj +
#          residuals + LayerNorm_ff + Swish FF   (epilogue at last KV step)
# ---------------------------------------------------------------------------
def _attn_ff_kernel(causal, has_mask, tq, tkv, *refs):
    if has_mask:
        mask_ref, refs = refs[0], refs[1:]
    (x_ref, q_ref, k_ref, v_ref, ln1_g_ref, ln1_b_ref, wo_ref, bo_ref,
     ln2_g_ref, ln2_b_ref, w1_ref, b1_ref, w2_ref, b2_ref,
     out_ref, m_sc, l_sc, acc_sc) = refs

    kv_i = pl.program_id(2)
    q0 = pl.program_id(1) * tq
    kv0 = kv_i * tkv

    @pl.when(kv_i == 0)
    def _():
        m_sc[...] = jnp.full(m_sc.shape, -jnp.inf, m_sc.dtype)
        l_sc[...] = jnp.zeros(l_sc.shape, l_sc.dtype)
        acc_sc[...] = jnp.zeros(acc_sc.shape, acc_sc.dtype)

    def online_update():
        q = q_ref[0]                                        # (H, tQ, Dh) bf16 (pre-scaled)
        k = k_ref[0]                                        # (H, tKV, Dh) bf16
        v = v_ref[0]                                        # (H, tKV, Dh) bf16
        s = jnp.einsum("hqd,hkd->hqk", q, k,
                       preferred_element_type=jnp.float32)  # (H, tQ, tKV)
        if has_mask:
            s = s + mask_ref[...][None]                     # additive (tQ, tKV)
        elif causal:
            rows = q0 + lax.broadcasted_iota(jnp.int32, (tq, tkv), 0)
            cols = kv0 + lax.broadcasted_iota(jnp.int32, (tq, tkv), 1)
            s = jnp.where((cols <= rows)[None], s, _NEG_INF)
        m_prev = m_sc[...]
        m_new = jnp.maximum(m_prev, jnp.max(s, axis=-1, keepdims=True))
        alpha = jnp.exp(m_prev - m_new)
        p = jnp.exp(s - m_new)
        l_sc[...] = alpha * l_sc[...] + jnp.sum(p, axis=-1, keepdims=True)
        acc_sc[...] = alpha * acc_sc[...] + jnp.einsum(
            "hqk,hkd->hqd", p.astype(jnp.bfloat16), v,
            preferred_element_type=jnp.float32)
        m_sc[...] = m_new

    if causal and not has_mask:
        # Skip KV tiles entirely in the causal future of this Q tile.
        @pl.when(kv0 <= q0 + tq - 1)
        def _():
            online_update()
    else:
        online_update()

    @pl.when(kv_i == pl.num_programs(2) - 1)
    def _():
        heads = acc_sc.shape[0]
        # Approx reciprocal runs on the EUP slot; tiny relative error vs exact
        # division — documented, fine at the 1e-2 parity tolerance.
        ctx = acc_sc[...] * pl.reciprocal(l_sc[...], approx=True)   # (H,tQ,Dh)
        # Head merge folded into the out-projection: per-head MXU dots
        # accumulated in f32.  No (tQ,D) ctx scratch, no masked sub-lane vst.
        attn = jnp.dot(ctx[0].astype(jnp.bfloat16), wo_ref[0],
                       preferred_element_type=jnp.float32)
        for h in range(1, heads):
            attn = attn + jnp.dot(ctx[h].astype(jnp.bfloat16), wo_ref[h],
                                  preferred_element_type=jnp.float32)
        attn = attn + bo_ref[0]

        xb = x_ref[0].astype(jnp.float32)                   # (tQ, D)
        a = _layer_norm(xb, ln1_g_ref[0], ln1_b_ref[0])     # recompute LN1 (cheap)
        x1 = xb + attn + a                                  # x = x + attn; x = x + a

        h2 = _layer_norm(x1, ln2_g_ref[0], ln2_b_ref[0])
        f = jnp.dot(h2.astype(jnp.bfloat16), w1_ref[...],
                    preferred_element_type=jnp.float32) + b1_ref[0]
        f = f * jax.nn.sigmoid(f)                           # Swish in f32
        f = jnp.dot(f.astype(jnp.bfloat16), w2_ref[...],
                    preferred_element_type=jnp.float32) + b2_ref[0]

        out_ref[0] = (x1 + f).astype(out_ref.dtype)


# ---------------------------------------------------------------------------
# Wrapper
# ---------------------------------------------------------------------------
def prepare_params(params, heads):
    """One-time parameter prep (call once, reuse every step):
       * bf16 weight casts (no per-call f32->bf16 HBM pass),
       * 1/sqrt(Dh) folded into the Q columns of Wqkv / bqkv,
       * Wo reshaped head-major (H, Dh, D) for the fused out-projection."""
    d = params["wo"].shape[0]
    dh = d // heads
    scale = 1.0 / math.sqrt(dh)
    wqkv = params["wqkv"].astype(jnp.float32).at[:, :d].multiply(scale)
    bqkv = params["bqkv"].astype(jnp.float32).at[:, :d].multiply(scale)
    return {
        "ln1_g": params["ln1_g"], "ln1_b": params["ln1_b"],
        "ln2_g": params["ln2_g"], "ln2_b": params["ln2_b"],
        "wqkv": wqkv.astype(jnp.bfloat16), "bqkv": bqkv,
        "wo3": params["wo"].reshape(heads, dh, d).astype(jnp.bfloat16),
        "bo": params["bo"],
        "w1": params["w1"].astype(jnp.bfloat16), "b1": params["b1"],
        "w2": params["w2"].astype(jnp.bfloat16), "b2": params["b2"],
    }


def transformer_layer(x, prep, *, heads, mask=None, causal=False, past=None):
    """x: (B, S, D) f32.  prep: output of prepare_params.
    mask: optional bool (S, S) attn_mask (True = disallowed).  If mask is None
    and causal=True the causal mask is generated in-kernel (no HBM mask)."""
    B, S, D = x.shape
    assert D % heads == 0
    Dh = D // heads
    RD = prep["w1"].shape[1]
    bf16 = jnp.bfloat16
    dh_p = max(Dh, _LANE)                      # lane-padded head dim (sizing)

    cap = _vmem_capacity()
    big_vmem = cap >= (96 << 20)               # v5e/v6e: 128 MiB, v7x: 64 MiB
    t1 = _pick_tile(S, 512 if big_vmem else 256)
    tq = _pick_tile(S, 256)
    tkv = _pick_tile(S, 512 if big_vmem else 256)
    n1, nq, nkv = S // t1, S // tq, S // tkv

    # ---- phase 1: LN_attn + fused QKV -> head-major Q/K/V ------------------
    ws1 = (2 * t1 * D * 4                                    # x (dbl-buffered)
           + 2 * 3 * heads * t1 * dh_p * 2                   # q/k/v out blocks
           + 2 * (D * 3 * D * 2 + 3 * D * 4 + 2 * D * 4)     # wqkv/bqkv/ln
           + 4 * t1 * D * 4)                                 # f32 intermediates
    qkv_shape = jax.ShapeDtypeStruct((B, heads, S, Dh), bf16)
    q, k, v = pl.pallas_call(
        partial(_ln_qkv_kernel, heads=heads, dh=Dh),
        out_shape=(qkv_shape, qkv_shape, qkv_shape),
        grid_spec=pltpu.PrefetchScalarGridSpec(
            num_scalar_prefetch=0,
            grid=(B, n1),
            in_specs=[
                pl.BlockSpec((1, t1, D), lambda b, s: (b, s, 0)),
                _rep((1, D)), _rep((1, D)),
                _rep((D, 3 * D)), _rep((1, 3 * D)),
            ],
            out_specs=[
                pl.BlockSpec((1, heads, t1, Dh), lambda b, s: (b, 0, s, 0)),
            ] * 3),
        compiler_params=pltpu.CompilerParams(
            dimension_semantics=("parallel", "parallel"),
            vmem_limit_bytes=_vmem_limit(ws1, cap)),
    )(x, prep["ln1_g"], prep["ln1_b"], prep["wqkv"], prep["bqkv"])

    # ---- phase 2: flash attention + out-proj + residuals + LN_ff + FF ------
    has_mask = mask is not None
    inputs, in_specs = [], []
    if has_mask:
        if mask.dtype == jnp.bool_:
            add_mask = jnp.where(mask, jnp.float32(_NEG_INF), jnp.float32(0.0))
        else:
            add_mask = mask.astype(jnp.float32)
        in_specs.append(pl.BlockSpec((tq, tkv), lambda b, qi, kv: (qi, kv)))
        inputs.append(add_mask)

    in_specs += [
        pl.BlockSpec((1, tq, D), lambda b, qi, kv: (b, qi, 0)),              # x
        pl.BlockSpec((1, heads, tq, Dh), lambda b, qi, kv: (b, 0, qi, 0)),   # q
        pl.BlockSpec((1, heads, tkv, Dh), lambda b, qi, kv: (b, 0, kv, 0)),  # k
        pl.BlockSpec((1, heads, tkv, Dh), lambda b, qi, kv: (b, 0, kv, 0)),  # v
        _rep((1, D)), _rep((1, D)),                                          # ln_attn
        _rep((heads, Dh, D)), _rep((1, D)),                                  # wo3, bo
        _rep((1, D)), _rep((1, D)),                                          # ln_ff
        _rep((D, RD)), _rep((1, RD)),                                        # ff W1,b1
        _rep((RD, D)), _rep((1, D)),                                         # ff W2,b2
    ]
    inputs += [x, q, k, v,
               prep["ln1_g"], prep["ln1_b"], prep["wo3"], prep["bo"],
               prep["ln2_g"], prep["ln2_b"],
               prep["w1"], prep["b1"], prep["w2"], prep["b2"]]

    ws2 = (2 * tq * D * 4                                     # x
           + 2 * heads * tq * dh_p * 2                        # q
           + 2 * 2 * heads * tkv * dh_p * 2                   # k, v
           + 2 * (heads * dh_p * D + D * RD + RD * D) * 2     # bf16 weights
           + 2 * ((3 * D + RD) * 4 + 4 * D * 4)               # biases + ln
           + 2 * tq * D * 4                                   # out
           + heads * tq * (dh_p + 2 * _LANE) * 4              # m/l/acc scratch
           + 2 * heads * tq * tkv * 4                         # s, p intermediates
           + tq * (RD + D) * 4)                               # ff intermediates
    if has_mask:
        ws2 += 2 * tq * tkv * 4

    out = pl.pallas_call(
        partial(_attn_ff_kernel, causal, has_mask, tq, tkv),
        out_shape=jax.ShapeDtypeStruct((B, S, D), x.dtype),
        grid_spec=pltpu.PrefetchScalarGridSpec(
            num_scalar_prefetch=0,
            grid=(B, nq, nkv),
            in_specs=in_specs,
            out_specs=pl.BlockSpec((1, tq, D), lambda b, qi, kv: (b, qi, 0)),
            scratch_shapes=[pltpu.VMEM((heads, tq, 1), jnp.float32),
                            pltpu.VMEM((heads, tq, 1), jnp.float32),
                            pltpu.VMEM((heads, tq, Dh), jnp.float32)]),
        compiler_params=pltpu.CompilerParams(
            dimension_semantics=("parallel", "parallel", "arbitrary"),
            vmem_limit_bytes=_vmem_limit(ws2, cap)),
    )(*inputs)

    # TODO(synk): `past` (KV-cache concat for incremental decoding) is not
    # implemented; passed through untouched (eval-mode return with past=None).
    # TODO(synk): single-buffer (pipeline_mode=pl.Buffered(1)) the grid-constant
    # weight blocks and column-tile wqkv once pipeline_mode support on the
    # installed Mosaic pallas_call pipeline is confirmed.
    return out, past


# ---------------------------------------------------------------------------
# Params / reference
# ---------------------------------------------------------------------------
def init_params(key, dims, heads, rate):
    ks = jax.random.split(key, 6)
    std = 0.02
    return {
        "ln1_g": jnp.ones((1, dims), jnp.float32),
        "ln1_b": jnp.zeros((1, dims), jnp.float32),
        "ln2_g": jnp.ones((1, dims), jnp.float32),
        "ln2_b": jnp.zeros((1, dims), jnp.float32),
        # weights stored as (in, out) == PyTorch weight.T
        "wqkv": std * jax.random.normal(ks[0], (dims, 3 * dims), jnp.float32),
        "bqkv": jnp.zeros((1, 3 * dims), jnp.float32),
        "wo":   std * jax.random.normal(ks[1], (dims, dims), jnp.float32),
        "bo":   jnp.zeros((1, dims), jnp.float32),
        "w1":   std * jax.random.normal(ks[2], (dims, rate * dims), jnp.float32),
        "b1":   std * jax.random.normal(ks[3], (1, rate * dims), jnp.float32),
        "w2":   std * jax.random.normal(ks[4], (rate * dims, dims), jnp.float32),
        "b2":   std * jax.random.normal(ks[5], (1, dims), jnp.float32),
    }


def reference(x, params, mask, heads):
    """Pure-JAX f32 reference (true module semantics, eval mode)."""
    B, S, D = x.shape
    Dh = D // heads

    def ln(v, g, b):
        mu = v.mean(-1, keepdims=True)
        var = ((v - mu) ** 2).mean(-1, keepdims=True)
        return (v - mu) / jnp.sqrt(var + LN_EPS) * g + b

    a = ln(x, params["ln1_g"], params["ln1_b"])
    qkv = a @ params["wqkv"] + params["bqkv"]
    q, k, v = jnp.split(qkv, 3, axis=-1)
    q = q.reshape(B, S, heads, Dh).transpose(0, 2, 1, 3)
    k = k.reshape(B, S, heads, Dh).transpose(0, 2, 1, 3)
    v = v.reshape(B, S, heads, Dh).transpose(0, 2, 1, 3)
    s = jnp.einsum("bhqd,bhkd->bhqk", q, k) / math.sqrt(Dh)
    if mask is not None:
        s = s + jnp.where(mask, _NEG_INF, 0.0)[None, None]
    p = jax.nn.softmax(s, axis=-1)
    o = jnp.einsum("bhqk,bhkd->bhqd", p, v).transpose(0, 2, 1, 3).reshape(B, S, D)
    attn_out = o @ params["wo"] + params["bo"]
    x1 = x + attn_out + a
    h2 = ln(x1, params["ln2_g"], params["ln2_b"])
    f = h2 @ params["w1"] + params["b1"]
    f = f * jax.nn.sigmoid(f)
    f = f @ params["w2"] + params["b2"]
    return x1 + f


if __name__ == "__main__":
    heads, dims, rate = 4, 32, 4
    batch, seq = 2, 8

    key = jax.random.PRNGKey(0)
    kx, kp = jax.random.split(key)
    x = jax.random.normal(kx, (batch, seq, dims), jnp.float32)
    params = init_params(kp, dims, heads, rate)
    prep = prepare_params(params, heads)          # one-time weight prep

    causal_bool = jnp.triu(jnp.ones((seq, seq), bool), k=1)   # True = masked
    ref = reference(x, params, causal_bool, heads)

    # Path 1: causal mask generated in-kernel (no HBM mask traffic).
    out, past = transformer_layer(x, prep, heads=heads, causal=True)
    out = jax.block_until_ready(out)
    assert out.shape == (batch, seq, dims)
    assert bool(jnp.all(jnp.isfinite(out)))
    # bf16 MXU operands -> slightly looser tolerance vs the f32 reference.
    assert jnp.allclose(out, ref, atol=1e-2, rtol=1e-2), \
        float(jnp.max(jnp.abs(out - ref)))

    # Path 2: explicit boolean attn_mask (nn.MultiheadAttention semantics).
    out2, _ = transformer_layer(x, prep, heads=heads, mask=causal_bool)
    out2 = jax.block_until_ready(out2)
    assert jnp.allclose(out2, ref, atol=1e-2, rtol=1e-2), \
        float(jnp.max(jnp.abs(out2 - ref)))

    print("KERNEL_OK")
</pallas_src>

<mosaic_0001>
module attributes {stable_mosaic.version = 11 : i64} {
  func.func @_ln_qkv_kernel(%arg0: i32, %arg1: i32, %arg2: memref<1x8x32xf32, #tpu.memory_space<vmem>>, %arg3: memref<1x32xf32, #tpu.memory_space<vmem>>, %arg4: memref<1x32xf32, #tpu.memory_space<vmem>>, %arg5: memref<32x96xbf16, #tpu.memory_space<vmem>>, %arg6: memref<1x96xf32, #tpu.memory_space<vmem>>, %arg7: memref<1x4x8x8xbf16, #tpu.memory_space<vmem>>, %arg8: memref<1x4x8x8xbf16, #tpu.memory_space<vmem>>, %arg9: memref<1x4x8x8xbf16, #tpu.memory_space<vmem>>) attributes {dimension_semantics = [#tpu.dimension_semantics<parallel>, #tpu.dimension_semantics<parallel>], iteration_bounds = array<i64: 2, 1>, scalar_prefetch = 0 : i64, scratch_operands = 0 : i64, tpu.core_type = #tpu.core_type<tc>, window_params = [{transform_indices = @transform_0, window_bounds = array<i64: 1, 8, 32>}, {pipeline_mode = #tpu.pipeline_mode<synchronous>, transform_indices = @transform_1, window_bounds = array<i64: 1, 32>}, {pipeline_mode = #tpu.pipeline_mode<synchronous>, transform_indices = @transform_2, window_bounds = array<i64: 1, 32>}, {pipeline_mode = #tpu.pipeline_mode<synchronous>, transform_indices = @transform_3, window_bounds = array<i64: 32, 96>}, {pipeline_mode = #tpu.pipeline_mode<synchronous>, transform_indices = @transform_4, window_bounds = array<i64: 1, 96>}, {transform_indices = @transform_5, window_bounds = array<i64: 1, 4, 8, 8>}, {transform_indices = @transform_6, window_bounds = array<i64: 1, 4, 8, 8>}, {transform_indices = @transform_7, window_bounds = array<i64: 1, 4, 8, 8>}]} {
    %c0 = arith.constant 0 : index
    %c0_0 = arith.constant 0 : index
    %c0_1 = arith.constant 0 : index
    %0 = vector.load %arg2[%c0, %c0_0, %c0_1] : memref<1x8x32xf32, #tpu.memory_space<vmem>>, vector<1x8x32xf32>
    %1 = vector.shape_cast %0 : vector<1x8x32xf32> to vector<8x32xf32>
    %c0_2 = arith.constant 0 : index
    %c0_3 = arith.constant 0 : index
    %2 = vector.load %arg3[%c0_2, %c0_3] : memref<1x32xf32, #tpu.memory_space<vmem>>, vector<1x32xf32>
    %3 = vector.shape_cast %2 : vector<1x32xf32> to vector<32xf32>
    %c0_4 = arith.constant 0 : index
    %c0_5 = arith.constant 0 : index
    %4 = vector.load %arg4[%c0_4, %c0_5] : memref<1x32xf32, #tpu.memory_space<vmem>>, vector<1x32xf32>
    %5 = vector.shape_cast %4 : vector<1x32xf32> to vector<32xf32>
    %cst = arith.constant dense<0.000000e+00> : vector<8xf32>
    %6 = vector.multi_reduction <add>, %1, %cst [1] : vector<8x32xf32> to vector<8xf32>
    %7 = vector.shape_cast %6 : vector<8xf32> to vector<8x1xf32>
    %cst_6 = arith.constant 3.200000e+01 : f32
    %8 = vector.broadcast %cst_6 : f32 to vector<8x1xf32>
    %9 = arith.divf %7, %8 : vector<8x1xf32>
    %10 = vector.broadcast %9 : vector<8x1xf32> to vector<8x32xf32>
    %11 = arith.subf %1, %10 : vector<8x32xf32>
    %12 = vector.broadcast %9 : vector<8x1xf32> to vector<8x32xf32>
    %13 = arith.subf %1, %12 : vector<8x32xf32>
    %14 = arith.mulf %11, %13 : vector<8x32xf32>
    %cst_7 = arith.constant dense<0.000000e+00> : vector<8xf32>
    %15 = vector.multi_reduction <add>, %14, %cst_7 [1] : vector<8x32xf32> to vector<8xf32>
    %16 = vector.shape_cast %15 : vector<8xf32> to vector<8x1xf32>
    %cst_8 = arith.constant 3.200000e+01 : f32
    %17 = vector.broadcast %cst_8 : f32 to vector<8x1xf32>
    %18 = arith.divf %16, %17 : vector<8x1xf32>
    %19 = vector.broadcast %9 : vector<8x1xf32> to vector<8x32xf32>
    %20 = arith.subf %1, %19 : vector<8x32xf32>
    %cst_9 = arith.constant 9.99999974E-6 : f32
    %21 = vector.broadcast %cst_9 : f32 to vector<8x1xf32>
    %22 = arith.addf %18, %21 : vector<8x1xf32>
    %23 = math.rsqrt %22 : vector<8x1xf32>
    %24 = vector.broadcast %23 : vector<8x1xf32> to vector<8x32xf32>
    %25 = arith.mulf %20, %24 : vector<8x32xf32>
    %26 = vector.shape_cast %3 : vector<32xf32> to vector<1x32xf32>
    %27 = vector.broadcast %26 : vector<1x32xf32> to vector<8x32xf32>
    %28 = arith.mulf %25, %27 : vector<8x32xf32>
    %29 = vector.shape_cast %5 : vector<32xf32> to vector<1x32xf32>
    %30 = vector.broadcast %29 : vector<1x32xf32> to vector<8x32xf32>
    %31 = arith.addf %28, %30 : vector<8x32xf32>
    %32 = arith.truncf %31 : vector<8x32xf32> to vector<8x32xbf16>
    %c0_10 = arith.constant 0 : index
    %c0_11 = arith.constant 0 : index
    %33 = vector.load %arg5[%c0_10, %c0_11] : memref<32x96xbf16, #tpu.memory_space<vmem>>, vector<32x96xbf16>
    %cst_12 = arith.constant dense<0.000000e+00> : vector<8x96xf32>
    %34 = tpu.matmul %32, %33, %cst_12 {dimension_numbers = #tpu.dot_dimension_numbers<[1], [0], [0], [1], [0, 0, 1, 1], [], []>} : vector<8x32xbf16>, vector<32x96xbf16>, vector<8x96xf32> -> vector<8x96xf32>
    %c0_13 = arith.constant 0 : index
    %c0_14 = arith.constant 0 : index
    %35 = vector.load %arg6[%c0_13, %c0_14] : memref<1x96xf32, #tpu.memory_space<vmem>>, vector<1x96xf32>
    %36 = vector.shape_cast %35 : vector<1x96xf32> to vector<96xf32>
    %37 = vector.shape_cast %36 : vector<96xf32> to vector<1x96xf32>
    %38 = vector.broadcast %37 : vector<1x96xf32> to vector<8x96xf32>
    %39 = arith.addf %34, %38 : vector<8x96xf32>
    %40 = arith.truncf %39 : vector<8x96xf32> to vector<8x96xbf16>
    %41 = vector.extract_strided_slice %40 {offsets = [0, 0], sizes = [8, 8], strides = [1, 1]} : vector<8x96xbf16> to vector<8x8xbf16>
    %c0_15 = arith.constant 0 : index
    %c0_16 = arith.constant 0 : index
    %c0_17 = arith.constant 0 : index
    %c0_18 = arith.constant 0 : index
    %42 = vector.load %arg7[%c0_15, %c0_16, %c0_17, %c0_18] : memref<1x4x8x8xbf16, #tpu.memory_space<vmem>>, vector<1x1x8x8xbf16>
    %43 = vector.shape_cast %42 : vector<1x1x8x8xbf16> to vector<8x8xbf16>
    %44 = vector.shape_cast %41 : vector<8x8xbf16> to vector<1x1x8x8xbf16>
    tpu.vector_store %arg7[%c0_15, %c0_16, %c0_17, %c0_18], %44 {strides = array<i32>} : memref<1x4x8x8xbf16, #tpu.memory_space<vmem>>, vector<1x1x8x8xbf16>,
    %45 = vector.extract_strided_slice %40 {offsets = [0, 32], sizes = [8, 8], strides = [1, 1]} : vector<8x96xbf16> to vector<8x8xbf16>
    %c0_19 = arith.constant 0 : index
    %c0_20 = arith.constant 0 : index
    %c0_21 = arith.constant 0 : index
    %c0_22 = arith.constant 0 : index
    %46 = vector.load %arg8[%c0_19, %c0_20, %c0_21, %c0_22] : memref<1x4x8x8xbf16, #tpu.memory_space<vmem>>, vector<1x1x8x8xbf16>
    %47 = vector.shape_cast %46 : vector<1x1x8x8xbf16> to vector<8x8xbf16>
    %48 = vector.shape_cast %45 : vector<8x8xbf16> to vector<1x1x8x8xbf16>
    tpu.vector_store %arg8[%c0_19, %c0_20, %c0_21, %c0_22], %48 {strides = array<i32>} : memref<1x4x8x8xbf16, #tpu.memory_space<vmem>>, vector<1x1x8x8xbf16>,
    %49 = vector.extract_strided_slice %40 {offsets = [0, 64], sizes = [8, 8], strides = [1, 1]} : vector<8x96xbf16> to vector<8x8xbf16>
    %c0_23 = arith.constant 0 : index
    %c0_24 = arith.constant 0 : index
    %c0_25 = arith.constant 0 : index
    %c0_26 = arith.constant 0 : index
    %50 = vector.load %arg9[%c0_23, %c0_24, %c0_25, %c0_26] : memref<1x4x8x8xbf16, #tpu.memory_space<vmem>>, vector<1x1x8x8xbf16>
    %51 = vector.shape_cast %50 : vector<1x1x8x8xbf16> to vector<8x8xbf16>
    %52 = vector.shape_cast %49 : vector<8x8xbf16> to vector<1x1x8x8xbf16>
    tpu.vector_store %arg9[%c0_23, %c0_24, %c0_25, %c0_26], %52 {strides = array<i32>} : memref<1x4x8x8xbf16, #tpu.memory_space<vmem>>, vector<1x1x8x8xbf16>,
    %53 = vector.extract_strided_slice %40 {offsets = [0, 8], sizes = [8, 8], strides = [1, 1]} : vector<8x96xbf16> to vector<8x8xbf16>
    %c0_27 = arith.constant 0 : index
    %c1 = arith.constant 1 : index
    %c0_28 = arith.constant 0 : index
    %c0_29 = arith.constant 0 : index
    %54 = vector.load %arg7[%c0_27, %c1, %c0_28, %c0_29] : memref<1x4x8x8xbf16, #tpu.memory_space<vmem>>, vector<1x1x8x8xbf16>
    %55 = vector.shape_cast %54 : vector<1x1x8x8xbf16> to vector<8x8xbf16>
    %56 = vector.shape_cast %53 : vector<8x8xbf16> to vector<1x1x8x8xbf16>
    tpu.vector_store %arg7[%c0_27, %c1, %c0_28, %c0_29], %56 {strides = array<i32>} : memref<1x4x8x8xbf16, #tpu.memory_space<vmem>>, vector<1x1x8x8xbf16>,
    %57 = vector.extract_strided_slice %40 {offsets = [0, 40], sizes = [8, 8], strides = [1, 1]} : vector<8x96xbf16> to vector<8x8xbf16>
    %c0_30 = arith.constant 0 : index
    %c1_31 = arith.constant 1 : index
    %c0_32 = arith.constant 0 : index
    %c0_33 = arith.constant 0 : index
    %58 = vector.load %arg8[%c0_30, %c1_31, %c0_32, %c0_33] : memref<1x4x8x8xbf16, #tpu.memory_space<vmem>>, vector<1x1x8x8xbf16>
    %59 = vector.shape_cast %58 : vector<1x1x8x8xbf16> to vector<8x8xbf16>
    %60 = vector.shape_cast %57 : vector<8x8xbf16> to vector<1x1x8x8xbf16>
    tpu.vector_store %arg8[%c0_30, %c1_31, %c0_32, %c0_33], %60 {strides = array<i32>} : memref<1x4x8x8xbf16, #tpu.memory_space<vmem>>, vector<1x1x8x8xbf16>,
    %61 = vector.extract_strided_slice %40 {offsets = [0, 72], sizes = [8, 8], strides = [1, 1]} : vector<8x96xbf16> to vector<8x8xbf16>
    %c0_34 = arith.constant 0 : index
    %c1_35 = arith.constant 1 : index
    %c0_36 = arith.constant 0 : index
    %c0_37 = arith.constant 0 : index
    %62 = vector.load %arg9[%c0_34, %c1_35, %c0_36, %c0_37] : memref<1x4x8x8xbf16, #tpu.memory_space<vmem>>, vector<1x1x8x8xbf16>
    %63 = vector.shape_cast %62 : vector<1x1x8x8xbf16> to vector<8x8xbf16>
    %64 = vector.shape_cast %61 : vector<8x8xbf16> to vector<1x1x8x8xbf16>
    tpu.vector_store %arg9[%c0_34, %c1_35, %c0_36, %c0_37], %64 {strides = array<i32>} : memref<1x4x8x8xbf16, #tpu.memory_space<vmem>>, vector<1x1x8x8xbf16>,
    %65 = vector.extract_strided_slice %40 {offsets = [0, 16], sizes = [8, 8], strides = [1, 1]} : vector<8x96xbf16> to vector<8x8xbf16>
    %c0_38 = arith.constant 0 : index
    %c2 = arith.constant 2 : index
    %c0_39 = arith.constant 0 : index
    %c0_40 = arith.constant 0 : index
    %66 = vector.load %arg7[%c0_38, %c2, %c0_39, %c0_40] : memref<1x4x8x8xbf16, #tpu.memory_space<vmem>>, vector<1x1x8x8xbf16>
    %67 = vector.shape_cast %66 : vector<1x1x8x8xbf16> to vector<8x8xbf16>
    %68 = vector.shape_cast %65 : vector<8x8xbf16> to vector<1x1x8x8xbf16>
    tpu.vector_store %arg7[%c0_38, %c2, %c0_39, %c0_40], %68 {strides = array<i32>} : memref<1x4x8x8xbf16, #tpu.memory_space<vmem>>, vector<1x1x8x8xbf16>,
    %69 = vector.extract_strided_slice %40 {offsets = [0, 48], sizes = [8, 8], strides = [1, 1]} : vector<8x96xbf16> to vector<8x8xbf16>
    %c0_41 = arith.constant 0 : index
    %c2_42 = arith.constant 2 : index
    %c0_43 = arith.constant 0 : index
    %c0_44 = arith.constant 0 : index
    %70 = vector.load %arg8[%c0_41, %c2_42, %c0_43, %c0_44] : memref<1x4x8x8xbf16, #tpu.memory_space<vmem>>, vector<1x1x8x8xbf16>
    %71 = vector.shape_cast %70 : vector<1x1x8x8xbf16> to vector<8x8xbf16>
    %72 = vector.shape_cast %69 : vector<8x8xbf16> to vector<1x1x8x8xbf16>
    tpu.vector_store %arg8[%c0_41, %c2_42, %c0_43, %c0_44], %72 {strides = array<i32>} : memref<1x4x8x8xbf16, #tpu.memory_space<vmem>>, vector<1x1x8x8xbf16>,
    %73 = vector.extract_strided_slice %40 {offsets = [0, 80], sizes = [8, 8], strides = [1, 1]} : vector<8x96xbf16> to vector<8x8xbf16>
    %c0_45 = arith.constant 0 : index
    %c2_46 = arith.constant 2 : index
    %c0_47 = arith.constant 0 : index
    %c0_48 = arith.constant 0 : index
    %74 = vector.load %arg9[%c0_45, %c2_46, %c0_47, %c0_48] : memref<1x4x8x8xbf16, #tpu.memory_space<vmem>>, vector<1x1x8x8xbf16>
    %75 = vector.shape_cast %74 : vector<1x1x8x8xbf16> to vector<8x8xbf16>
    %76 = vector.shape_cast %73 : vector<8x8xbf16> to vector<1x1x8x8xbf16>
    tpu.vector_store %arg9[%c0_45, %c2_46, %c0_47, %c0_48], %76 {strides = array<i32>} : memref<1x4x8x8xbf16, #tpu.memory_space<vmem>>, vector<1x1x8x8xbf16>,
    %77 = vector.extract_strided_slice %40 {offsets = [0, 24], sizes = [8, 8], strides = [1, 1]} : vector<8x96xbf16> to vector<8x8xbf16>
    %c0_49 = arith.constant 0 : index
    %c3 = arith.constant 3 : index
    %c0_50 = arith.constant 0 : index
    %c0_51 = arith.constant 0 : index
    %78 = vector.load %arg7[%c0_49, %c3, %c0_50, %c0_51] : memref<1x4x8x8xbf16, #tpu.memory_space<vmem>>, vector<1x1x8x8xbf16>
    %79 = vector.shape_cast %78 : vector<1x1x8x8xbf16> to vector<8x8xbf16>
    %80 = vector.shape_cast %77 : vector<8x8xbf16> to vector<1x1x8x8xbf16>
    tpu.vector_store %arg7[%c0_49, %c3, %c0_50, %c0_51], %80 {strides = array<i32>} : memref<1x4x8x8xbf16, #tpu.memory_space<vmem>>, vector<1x1x8x8xbf16>,
    %81 = vector.extract_strided_slice %40 {offsets = [0, 56], sizes = [8, 8], strides = [1, 1]} : vector<8x96xbf16> to vector<8x8xbf16>
    %c0_52 = arith.constant 0 : index
    %c3_53 = arith.constant 3 : index
    %c0_54 = arith.constant 0 : index
    %c0_55 = arith.constant 0 : index
    %82 = vector.load %arg8[%c0_52, %c3_53, %c0_54, %c0_55] : memref<1x4x8x8xbf16, #tpu.memory_space<vmem>>, vector<1x1x8x8xbf16>
    %83 = vector.shape_cast %82 : vector<1x1x8x8xbf16> to vector<8x8xbf16>
    %84 = vector.shape_cast %81 : vector<8x8xbf16> to vector<1x1x8x8xbf16>
    tpu.vector_store %arg8[%c0_52, %c3_53, %c0_54, %c0_55], %84 {strides = array<i32>} : memref<1x4x8x8xbf16, #tpu.memory_space<vmem>>, vector<1x1x8x8xbf16>,
    %85 = vector.extract_strided_slice %40 {offsets = [0, 88], sizes = [8, 8], strides = [1, 1]} : vector<8x96xbf16> to vector<8x8xbf16>
    %c0_56 = arith.constant 0 : index
    %c3_57 = arith.constant 3 : index
    %c0_58 = arith.constant 0 : index
    %c0_59 = arith.constant 0 : index
    %86 = vector.load %arg9[%c0_56, %c3_57, %c0_58, %c0_59] : memref<1x4x8x8xbf16, #tpu.memory_space<vmem>>, vector<1x1x8x8xbf16>
    %87 = vector.shape_cast %86 : vector<1x1x8x8xbf16> to vector<8x8xbf16>
    %88 = vector.shape_cast %85 : vector<8x8xbf16> to vector<1x1x8x8xbf16>
    tpu.vector_store %arg9[%c0_56, %c3_57, %c0_58, %c0_59], %88 {strides = array<i32>} : memref<1x4x8x8xbf16, #tpu.memory_space<vmem>>, vector<1x1x8x8xbf16>,
    return
  }
  func.func @transform_0(%arg0: i32, %arg1: i32) -> (i32, i32, i32) {
    %c0_i32 = arith.constant 0 : i32
    %c0_i32_0 = arith.constant 0 : i32
    return %arg0, %arg1, %c0_i32 : i32, i32, i32
  }
  func.func @transform_1(%arg0: i32, %arg1: i32) -> (i32, i32) {
    %c0_i32 = arith.constant 0 : i32
    %c0_i32_0 = arith.constant 0 : i32
    %c0_i32_1 = arith.constant 0 : i32
    return %c0_i32, %c0_i32_0 : i32, i32
  }
  func.func @transform_2(%arg0: i32, %arg1: i32) -> (i32, i32) {
    %c0_i32 = arith.constant 0 : i32
    %c0_i32_0 = arith.constant 0 : i32
    %c0_i32_1 = arith.constant 0 : i32
    return %c0_i32, %c0_i32_0 : i32, i32
  }
  func.func @transform_3(%arg0: i32, %arg1: i32) -> (i32, i32) {
    %c0_i32 = arith.constant 0 : i32
    %c0_i32_0 = arith.constant 0 : i32
    %c0_i32_1 = arith.constant 0 : i32
    return %c0_i32, %c0_i32_0 : i32, i32
  }
  func.func @transform_4(%arg0: i32, %arg1: i32) -> (i32, i32) {
    %c0_i32 = arith.constant 0 : i32
    %c0_i32_0 = arith.constant 0 : i32
    %c0_i32_1 = arith.constant 0 : i32
    return %c0_i32, %c0_i32_0 : i32, i32
  }
  func.func @transform_5(%arg0: i32, %arg1: i32) -> (i32, i32, i32, i32) {
    %c0_i32 = arith.constant 0 : i32
    %c0_i32_0 = arith.constant 0 : i32
    %c0_i32_1 = arith.constant 0 : i32
    return %arg0, %c0_i32, %arg1, %c0_i32_0 : i32, i32, i32, i32
  }
  func.func @transform_6(%arg0: i32, %arg1: i32) -> (i32, i32, i32, i32) {
    %c0_i32 = arith.constant 0 : i32
    %c0_i32_0 = arith.constant 0 : i32
    %c0_i32_1 = arith.constant 0 : i32
    return %arg0, %c0_i32, %arg1, %c0_i32_0 : i32, i32, i32, i32
  }
  func.func @transform_7(%arg0: i32, %arg1: i32) -> (i32, i32, i32, i32) {
    %c0_i32 = arith.constant 0 : i32
    %c0_i32_0 = arith.constant 0 : i32
    %c0_i32_1 = arith.constant 0 : i32
    return %arg0, %c0_i32, %arg1, %c0_i32_0 : i32, i32, i32, i32
  }
}

</mosaic_0001>

<bundles_post_ra>
// kernel: tpu_custom_call.1
= control target key start
LH: loop header
LB: loop body
LE: loop exit
PB: predicated region body
PF: predicated region fallthrough
CT: control target
= control target key end

     0   :  { %s1433_s0 = inlined_call_operand.hbm [shape: f32[2,8,32], index: 0, kind: input, shape index: {}]   ;;  %s1434_s1 = inlined_call_operand.hbm [shape: f32[1,32], index: 1, kind: input, shape index: {}]   ;;  %s1435_s2 = inlined_call_operand.vmem [shape: f32[1,32], index: 2, kind: input, shape index: {}]   ;;  %s1436_s3 = inlined_call_operand.hbm [shape: bf16[32,96], index: 3, kind: input, shape index: {}]   ;;  %s1437_s4 = inlined_call_operand.vmem [shape: f32[1,96], index: 4, kind: input, shape index: {}]   ;;  %s1438_s5 = inlined_call_operand.hbm [shape: bf16[2,4,8,8], index: 5, kind: output, shape index: {0}]   ;;  %s1439_s6 = inlined_call_operand.hbm [shape: bf16[2,4,8,8], index: 6, kind: output, shape index: {1}]   ;;  %s1440_s7 = inlined_call_operand.hbm [shape: bf16[2,4,8,8], index: 7, kind: output, shape index: {2}]  }
   0x1   :  { %1444 = sst [smem:[#allocation16_spill]] %s1433_s0 }
   0x2   :  { %1445 = sst [smem:[#allocation17_spill]] %s1434_s1 }
   0x3   :  { %1446 = sst [smem:[#allocation18_spill]] %s1435_s2 }
   0x4   :  { %1447 = sst [smem:[#allocation19_spill]] %s1436_s3 }
   0x5   :  { %13 = vsyncpa [#allocation3], 0 }
   0x6   :  { %15 = vsyncpa [#allocation3 + $0x1], 0 }
   0x7   :  { %16 = vsyncpa [#allocation6], 0 }
   0x8   :  { %17 = vsyncpa [#allocation4], 0 }
   0x9   :  { %19 = vsyncpa [#allocation4 + $0x1], 0 }
   0xa   :  { %20 = vsyncpa [#allocation10], 0 }
   0xb   :  { %22 = vsyncpa [#allocation10 + $0x1], 0  ;;  %s1194_s24 = smov 0   ;;  %s1196_s25 = smov 0  }
   0xc   :  { %s1198_s26 = smov 0   ;;  %s1200_s27 = smov 0  }
   0xd   :  { %s1202_s28 = smov 0   ;;  %s1204_s29 = smov 0  }
   0xe LB: > { %s1225_s30 = sadd.s32 4294967295, %s1135_s29   ;;  %s1441_s8 = sadd.s32 4294967294, %s1135_s29   ;;  %s1135_s29 = sphi %s1204_s29, %s28_s29   ;;  %s1131_s28 = sphi %s1202_s28, %s1462_s28   ;;  %s1127_s27 = sphi %s1200_s27, %s1461_s27   ;;  %s1123_s26 = sphi %s1198_s26, %s1460_s26   ;;  %s1119_s25 = sphi %s1196_s25, %s1459_s25   ;;  %s1115_s24 = sphi %s1194_s24, %s1458_s24  }
   0xf   : > { %p62_p0 = scmp.ne.s32.totalorder %s1119_s25, %s1115_s24  ;;  %p63_p1 = scmp.eq.s32.totalorder %s1225_s30, 0 }
  0x10   : > { %p178_p2 = scmp.eq.s32.totalorder %s1441_s8, 1  ;;  %p737_p4 = scmp.ge.s32.totalorder %s1135_s29, 1 }
  0x11   : > { %p1235_p3 = por %p63_p1, %p62_p0  ;;  %p241_p6 = scmp.lt.s32.totalorder %s1135_s29, 3 }
  0x12   : > { %p1240_p5 = por %p178_p2, %p62_p0  ;;  %s1450_s1 = sld [smem:[#allocation17_spill]] }
  0x13   : > { %p1248_p7 = pnand %p737_p4, %p241_p6  ;;  %p740_p8 = scmp.ge.s32.totalorder %s1135_s29, 2 }
  0x14   : > { %s1137_s15 = smov [#allocation5]   ;;  %s1452_s3 = sld [smem:[#allocation19_spill]] }
  0x15   : > { %p800_p9 = pneg %p1248_p7  ;;  %s255_s16 = sshll.u32 %s1137_s15, 4  ;;  %s256_s16 = int_to_ptr.vmem [resolvable:$true] %s255_s16 }
  0x16   : > { %s1138_s20 = smov [#allocation7]   ;;  %s1139_s22 = smov 64  }
  0x17   : > { %p801_p10 = pnand %p800_p9, %p63_p1  ;;  %s269_s21 = sshll.u32 %s1138_s20, 4  ;;  %s270_s21 = int_to_ptr.vmem [resolvable:$true] %s269_s21 }
  0x18   : > { %s253_s13 = sshll.u32 %s1450_s1, 4  ;;  %s1140_s23 = smov 4   ;;  %s254_s13 = int_to_ptr.hbm [resolvable:$true] %s253_s13 }
  0x19   : > { %803 = dma.hbm_to_vmem [thread:$0]  (!%p801_p10), %s254_s13, 16, %s256_s16, [#allocation6]  }
  0x1a   : > { %s267_s19 = sshll.u32 %s1452_s3, 4  ;;  %p172_p11 = scmp.eq.s32.totalorder %s1225_s30, 1  ;;  %s268_s19 = int_to_ptr.hbm [resolvable:$true] %s267_s19 }
  0x1b   : > { %806 = dma.hbm_to_vmem [thread:$0]  (!%p801_p10), %s268_s19, 256, %s270_s21, [#allocation6], %s1139_s22, %s1139_s22, %s1140_s23  }
  0x1c   : > { %s40_s11 = sadd.s32 1, %s1131_s28  ;;  %s49_s12 = sadd.s32 1, %s1123_s26 }
  0x1d   : > { %p42_p12 = scmp.ge.s32.totalorder %s40_s11, 2  ;;  %p56_p13 = scmp.ne.s32.totalorder %s1123_s26, %s1119_s25 }
  0x1e   : > { %p57_p0 = scmp.eq.s32.totalorder %s1135_s29, 0  ;;  %p823_p4 = scmp.lt.s32.totalorder %s1135_s29, 2 }
  0x1f   : > { %s1464_s11 = smov (%p42_p12, %s40_s11), 0  ;;  %p1268_p2 = por %p172_p11, %p56_p13 }
  0x20   : > { %s44_s13 = ssub.s32 %s1131_s28, %s1464_s11  ;;  %s286_s16 = sand.u32 1, %s1123_s26  }
  0x21   : > { %p47_p6 = scmp.eq.s32.totalorder %s44_s13, 0  ;;  %p58_p9 = por %p57_p0, %p56_p13 }
  0x22   : > { %s741_s17 = sshll.u32 %s286_s16, 3  ;;  %s742_s18 = sshll.u32 %s1131_s28, 3 }
  0x23   : > { %s1278_s19 = scalar_select %p47_p6, %s1123_s26, %s49_s12  }
  0x24   : > { %s1454_s0 = sld [smem:[#allocation16_spill]]  ;;  %s290_s8 = scalar_lea.vmem [#allocation2], %s741_s17 }
  0x25   : > { %s299_s1 = sshll.u32 %s290_s8, 4  ;;  %p808_p10 = pnand %p823_p4, %p58_p9  ;;  %s300_s1 = int_to_ptr.vmem [resolvable:$true] %s299_s1 }
  0x26   : > { %s287_s3 = scalar_lea.sflag [#allocation3], %s286_s16  ;;  %s1288_s12 = sand.u32 (!%p1248_p7), 1, %s1119_s25  }
  0x27   : > { %s744_s13 = sshll.u32 (!%p1248_p7), %s1288_s12, 3 }
  0x28   : > { %308 = sbr.rel (%p1248_p7) target bundleno = 608 (0x260), region = 40  ;;  %s314_s20 = scalar_lea.vmem (!%p1248_p7), [#allocation2], %s744_s13 }
  0x2a   : > { %s295_s22 = scalar_lea.hbm %s1454_s0, %s742_s18  ;;  %s311_s18 = scalar_lea.sflag (!%p1248_p7), [#allocation3], %s1288_s12 }
  0x2b   : > { %s297_s23 = sshll.u32 %s295_s22, 4  ;;  %s298_s23 = int_to_ptr.hbm [resolvable:$true] %s297_s23 }
  0x2c   : > { %810 = dma.hbm_to_vmem [thread:$0]  (!%p808_p10), %s298_s23, 128, %s300_s1, %s287_s3  }
  0x2d   : > { %1098 = dma.done.wait (%p1235_p3), %s311_s18, 128  }
  0x2e   : > { %1100 = vsyncadd (%p1235_p3), %s311_s18, 4294967168 }
  0x2f   : > { %1102 = dma.done.wait (%p63_p1), [#allocation6], 272  }
  0x30   : > { %1104 = vsyncadd (%p63_p1), [#allocation6], 4294967024  ;;  %vm370_vm0 = vcmask 261120   ;;  %v367_v0 = vld [vmem:[%s314_s20] sm:$0xff]  ;;  %v1141_v2 = vmov 32.0   ;;  %v779_v15 = vld [vmem:[#allocation7] sm:$0xff] }
  0x31   : > { %v371_v1 = vsel %vm370_vm0, %v367_v0, 0.0  ;;  %895 = vrcp.f32 %v1141_v2  ;;  %v780_v14 = vld [vmem:[#allocation7 + $0x8] sm:$0xff]  ;;  %v892_v25 = vld [vmem:[#allocation5] ss:$0 sm:$0xff]  ;;  %s1455_s2 = sld [smem:[#allocation18_spill]]  ;;  %s1310_s14 = sshll.u32 %s1288_s12, 4 }
  0x32   : > { %372 = vadd.xlane.f32.xlu0 %v371_v1  ;;  %438 = vmatpush.bf16.msra.mxu0 %v780_v14  ;;  %v894_v32 = vld [vmem:[%s1437_s4] ss:$0 sm:$0xff]  ;;  %vm446_vm5 = vcmask 60416   ;;  %s1442_s16 = smov 64   ;;  %s1143_s17 = smov 80  }
  0x33   : > { %s1314_s21 = scalar_lea.vmem [#allocation8], %s1310_s14  ;;  %s1144_s22 = smov 96  }
  0x34   : > { %s1145_s23 = smov 72   ;;  %s1146_s13 = smov 88  }
  0x35   : > { %s1147_s18 = smov 56   ;;  %s1148_s20 = smov 120  }
  0x36   : > { %439 = vmatpush.bf16.msra.mxu0 %v779_v15  ;;  %s1149_s1 = smov 48   ;;  %s1150_s3 = smov 112  }
  0x37   : > { %v896_v3 = vpop.eup %895  ;;  %v893_v28 = vld [vmem:[%s1455_s2] ss:$0 sm:$0xff]  ;;  %s1151_s8 = smov 40   ;;  %s1152_s9 = smov 104  }
  0x38   : > { %v375_v4 = vmul.f32 32.0, %v896_v3  ;;  %vm379_vm1 = vweird.f32 %v896_v3 }
  0x3a   : > { %v376_v5 = vsub.f32 1.0, %v375_v4 }
  0x3c   : > { %v377_v6 = vmul.f32 %v896_v3, %v376_v5 }
  0x3e   : > { %v378_v7 = vadd.f32 %v896_v3, %v377_v6 }
  0x40   : > { %v380_v8 = vsel %vm379_vm1, %v896_v3, %v378_v7 }
  0xa5   : > { %v373_v9 = vpop.xlane.xlu0 %372 }
  0xa6   : > { %v381_v10 = vmul.f32 %v380_v8, %v373_v9 }
  0xa8   : > { %v382_v11 = vsub.f32 %v367_v0, %v381_v10 }
  0xaa   : > { %v383_v12 = vmul.f32 %v382_v11, %v382_v11 }
  0xac   : > { %v384_v13 = vsel %vm370_vm0, %v383_v12, 0.0 }
  0xad   : > { %385 = vadd.xlane.f32.xlu0 %v384_v13 }
 0x120   : > { %v386_v16 = vpop.xlane.xlu0 %385 }
 0x121   : > { %v387_v17 = vmul.f32 %v386_v16, %v380_v8 }
 0x123   : > { %v388_v18 = vadd.f32 1e-05, %v387_v17 }
 0x125   : > { %897 = vrsqrt.f32 %v388_v18  ;;  %vm395_vm3 = vweird.f32 %v388_v18 }
 0x12b   : > { %v898_v19 = vpop.eup %897 }
 0x12c   : > { %v390_v20 = vmul.f32 %v898_v19, %v388_v18  ;;  %vm396_vm2 = vweird.f32 %v898_v19 }
 0x12d   : > { %vm397_vm4 = vmor %vm395_vm3, %vm396_vm2 }
 0x12e   : > { %v391_v21 = vmul.f32 %v898_v19, %v390_v20 }
 0x130   : > { %v392_v22 = vmul.f32 0.5, %v391_v21 }
 0x132   : > { %v393_v23 = vsub.f32 1.5, %v392_v22 }
 0x134   : > { %v394_v24 = vmul.f32 %v898_v19, %v393_v23 }
 0x136   : > { %v398_v26 = vsel %vm397_vm4, %v898_v19, %v394_v24 }
 0x137   : > { %v399_v27 = vmul.f32 %v398_v26, %v382_v11 }
 0x139   : > { %v403_v29 = vmul.f32 %v892_v25, %v399_v27 }
 0x13b   : > { %v407_v30 = vadd.f32 %v893_v28, %v403_v29 }
 0x13d   : > { %v408_v31 = vpack.c.bf16 %v407_v30, %v407_v30 }
 0x13f   : > { %758 = vmatmul.msk.bf16.vlgmr.msra.gmra.mxu0 %vm370_vm0, %v408_v31 }
 0x1bc   : > { %v441_v33 = vpop.f32.mrf.mxu0 }
 0x1bd   : > { %v442_v34 = vadd.f32 %v894_v32, %v441_v33 }
 0x1bf   : > { %v445_v35 = vpack.c.bf16 %v442_v34, %v442_v34 }
 0x1c1   : > { %453 = vrot.lane.b32.xlu0 %v445_v35, %s1442_s16  ;;  %477 = vrot.lane.b32.xlu2 %v445_v35, %s1143_s17  ;;  %447 = vst.msk [vmem:[%s1314_s21] sm:$0xf] %vm446_vm5, %v445_v35  ;;  %s358_s17 = scalar_lea.vmem [#allocation9], %s1310_s14 }
 0x1c2   : > { %449 = vrot.lane.b32.xlu1 %v445_v35, %s1144_s22  ;;  %s365_s22 = scalar_lea.vmem [#allocation11], %s1310_s14 }
 0x1c3   : > { %s562_s16 = sshll.u32 %s365_s22, 4  ;;  %s1343_s16 = int_to_ptr.vmem [resolvable:$true] %s562_s16 }
 0x1c4   : > { %v443_v36 = vpop.f32.mrf.mxu0 }
 0x1c9   : > { %492 = vrot.lane.b32.xlu2 %v445_v35, %s1145_s23  ;;  %s1324_s23 = sshll.u32 %s1127_s27, 4 }
 0x1ca   : > { %462 = vrot.lane.b32.xlu1 %v445_v35, %s1146_s13  ;;  %s561_s27 = scalar_lea.hbm %s1440_s7, %s1324_s23 }
 0x1cb   : > { %s1340_s0 = sshll.u32 %s561_s27, 4  ;;  %s565_s0 = int_to_ptr.hbm [resolvable:$true] %s1340_s0 }
 0x1d1   : > { %467 = vrot.lane.b32.xlu2 %v445_v35, %s1147_s18 }
 0x1d2   : > { %457 = vrot.lane.b32.xlu1 %v445_v35, %s1148_s20  ;;  %s543_s20 = scalar_lea.hbm %s1439_s6, %s1324_s23 }
 0x1d9   : > { %482 = vrot.lane.b32.xlu2 %v445_v35, %s1149_s1  ;;  %s1009_s1 = scalar_lea.hbm %s1439_s6, 32 }
 0x1da   : > { %472 = vrot.lane.b32.xlu1 %v445_v35, %s1150_s3  ;;  %s544_s3 = sshll.u32 %s358_s17, 4  ;;  %s545_s3 = int_to_ptr.vmem [resolvable:$true] %s544_s3 }
 0x1e1   : > { %497 = vrot.lane.b32.xlu2 %v445_v35, %s1151_s8  ;;  %s507_s8 = sand.u32 1, %s1225_s30  }
 0x1e2   : > { %487 = vrot.lane.b32.xlu1 %v445_v35, %s1152_s9  ;;  %s1338_s9 = sshll.u32 %s543_s20, 4  ;;  %s1348_s30 = scalar_lea.sflag [#allocation10], %s507_s8  ;;  %s547_s9 = int_to_ptr.hbm [resolvable:$true] %s1338_s9 }
 0x1e3   : > { %s1003_s13 = sshra.s32 %s547_s9, 4  ;;  %s1004_s13 = int_to_ptr.hbm [resolvable:$true] %s1003_s13 }
 0x1e4   : > { %s1005_s18 = scalar_lea.hbm %s1004_s13, 16  ;;  %p1010_p11 = scmp.lt.s32.totalorder %s1004_s13, %s1439_s6 }
 0x1e5   : > { %p1006_p1 = scmp.ne.s32.totalorder %s1004_s13, %s1005_s18  ;;  %p1011_p12 = scmp.lt.s32.totalorder %s1009_s1, %s1005_s18 }
 0x1e7   : > { %p1007_p3 = pnand %p1006_p1, %p1268_p2  ;;  %p1012_p13 = por %p1011_p12, %p1010_p11 }
 0x1e9   : > { %p1008_p7 = pneg %p1007_p3 }
 0x1eb   : > { %p1013_p0 = pnand %p1012_p13, %p1008_p7 }
 0x21b   : > { %v478_v37 = vpop.permute.xlu2 %477 }
 0x21c   : > { %763 = vst.msk [vmem:[%s358_s17 + $0x8] sm:$0xf] %vm446_vm5, %v478_v37 }
 0x223   : > { %v493_v38 = vpop.permute.xlu2 %492 }
 0x224   : > { %766 = vst.msk [vmem:[%s358_s17 + $0xc] sm:$0xf] %vm446_vm5, %v493_v38 }
 0x22b   : > { %v468_v39 = vpop.permute.xlu2 %467 }
 0x22c   : > { %761 = vst.msk [vmem:[%s365_s22 + $0x4] sm:$0xf] %vm446_vm5, %v468_v39 }
 0x233   : > { %v454_v40 = vpop.permute.xlu0 %453  ;;  %v483_v41 = vpop.permute.xlu2 %482 }
 0x234   : > { %456 = vst.msk [vmem:[%s365_s22] sm:$0xf] %vm446_vm5, %v454_v40  ;;  %v450_v42 = vpop.permute.xlu1 %449 }
 0x235   : > { %764 = vst.msk [vmem:[%s365_s22 + $0x8] sm:$0xf] %vm446_vm5, %v483_v41 }
 0x236   : > { %452 = vst.msk [vmem:[%s358_s17] sm:$0xf] %vm446_vm5, %v450_v42 }
 0x23b   : > { %v498_v43 = vpop.permute.xlu2 %497 }
 0x23c   : > { %767 = vst.msk [vmem:[%s365_s22 + $0xc] sm:$0xf] %vm446_vm5, %v498_v43  ;;  %v463_v44 = vpop.permute.xlu1 %462 }
 0x23d   : > { %760 = vst.msk [vmem:[%s358_s17 + $0x4] sm:$0xf] %vm446_vm5, %v463_v44 }
 0x23e   : > { %1016 = shalt.err (!%p1013_p0)
}
 0x23f   : > { %s1153_s17 = smov 4   ;;  %s1456_s22 = smov 64  }
 0x240   : > { %795 = dma.vmem_to_hbm [thread:$0]  (%p1268_p2), %s545_s3, 256, %s547_s9, %s1348_s30, %s1456_s22, %s1456_s22, %s1153_s17  }
 0x241   : > { %s1031_s8 = sshra.s32 %s565_s0, 4  ;;  %s1037_s18 = scalar_lea.hbm %s1440_s7, 32  ;;  %s1032_s8 = int_to_ptr.hbm [resolvable:$true] %s1031_s8 }
 0x242   : > { %s1033_s20 = scalar_lea.hbm %s1032_s8, 16  ;;  %p1038_p10 = scmp.lt.s32.totalorder %s1032_s8, %s1440_s7 }
 0x243   : > { %p1034_p4 = scmp.ne.s32.totalorder %s1032_s8, %s1033_s20  ;;  %p1039_p1 = scmp.lt.s32.totalorder %s1037_s18, %s1033_s20 }
 0x245   : > { %p1035_p6 = pnand %p1034_p4, %p1268_p2  ;;  %p1040_p3 = por %p1039_p1, %p1038_p10 }
 0x247   : > { %p1036_p9 = pneg %p1035_p6 }
 0x249   : > { %p1041_p7 = pnand %p1040_p3, %p1036_p9 }
 0x24b   : > { %1044 = shalt.err (!%p1041_p7)
}
 0x24c   : > { %796 = dma.vmem_to_hbm [thread:$0]  (%p1268_p2), %s1343_s16, 256, %s565_s0, %s1348_s30, %s1456_s22, %s1456_s22, %s1153_s17   ;;  %v458_v45 = vpop.permute.xlu1 %457 }
 0x24d   : > { %759 = vst.msk [vmem:[%s1314_s21 + $0x4] sm:$0xf] %vm446_vm5, %v458_v45  ;;  %s525_s27 = scalar_lea.hbm %s1438_s5, %s1324_s23  ;;  %s526_s8 = sshll.u32 %s1314_s21, 4  ;;  %s527_s8 = int_to_ptr.vmem [resolvable:$true] %s526_s8 }
 0x24e   : > { %s528_s20 = sshll.u32 %s525_s27, 4  ;;  %s503_s2 = scalar_lea.sflag [#allocation4], %s1288_s12  ;;  %s529_s20 = int_to_ptr.hbm [resolvable:$true] %s528_s20 }
 0x24f   : > { %s1059_s0 = sshra.s32 %s529_s20, 4  ;;  %s1065_s18 = scalar_lea.hbm %s1438_s5, 32  ;;  %s1060_s0 = int_to_ptr.hbm [resolvable:$true] %s1059_s0 }
 0x250   : > { %s1061_s16 = scalar_lea.hbm %s1060_s0, 16  ;;  %p1066_p0 = scmp.lt.s32.totalorder %s1060_s0, %s1438_s5 }
 0x251   : > { %p1062_p11 = scmp.ne.s32.totalorder %s1060_s0, %s1061_s16  ;;  %p1067_p4 = scmp.lt.s32.totalorder %s1065_s18, %s1061_s16 }
 0x253   : > { %p1063_p12 = pnand %p1062_p11, %p1268_p2  ;;  %p1068_p6 = por %p1067_p4, %p1066_p0 }
 0x254   : > { %v473_v46 = vpop.permute.xlu1 %472 }
 0x255   : > { %762 = vst.msk [vmem:[%s1314_s21 + $0x8] sm:$0xf] %vm446_vm5, %v473_v46  ;;  %p1064_p13 = pneg %p1063_p12 }
 0x257   : > { %p1069_p9 = pnand %p1068_p6, %p1064_p13 }
 0x25c   : > { %v488_v47 = vpop.permute.xlu1 %487 }
 0x25d   : > { %765 = vst.msk [vmem:[%s1314_s21 + $0xc] sm:$0xf] %vm446_vm5, %v488_v47 }
 0x25e   : > { %1072 = shalt.err (!%p1069_p9)
}
 0x25f   : > { %794 = dma.vmem_to_hbm [thread:$0]  (%p1268_p2), %s527_s8, 256, %s529_s20, %s503_s2, %s1456_s22, %s1456_s22, %s1153_s17  }
 0x260 PF: > { %s579_s12 = sand.u32 1, %s1115_s24   ;;  %p812_p10 = pnand %p740_p8, %p1240_p5 }
 0x261   : > { %s580_s21 = scalar_lea.sflag [#allocation4], %s579_s12 }
 0x262   : > { %p813_p1 = pneg %p812_p10 }
 0x264   : > { %1106 = dma.done.wait (%p813_p1), %s580_s21, 256  }
 0x265   : > { %1108 = vsyncadd (%p813_p1), %s580_s21, 4294967040  ;;  %s1457_s1 = sadd.s32 4294967294, %s1135_s29  }
 0x266   : > { %s589_s3 = sand.u32 1, %s1457_s1  }
 0x267   : > { %s590_s15 = scalar_lea.sflag [#allocation10], %s589_s3 }
 0x268   : > { %1110 = dma.done.wait (%p813_p1), %s590_s15, 512  }
 0x269   : > { %1112 = vsyncadd (%p813_p1), %s590_s15, 4294966784  ;;  %s28_s29 = sadd.s32 1, %s1135_s29   ;;  %s1458_s24 = smov %s1119_s25 }
 0x26a   : > { %p25_p2 = scmp.ge.s32.totalorder %s28_s29, 4   ;;  %s1459_s25 = smov %s1123_s26 }
 0x26b   : > { %s1460_s26 = smov %s1278_s19  ;;  %s1461_s27 = smov %s1131_s28 }
 0x26c   : > { %s1462_s28 = smov %s1464_s11  ;;  %27 = sbr.rel (!%p25_p2) target bundleno = 14 (0xe), region = 134 }
 0x271   :  { %606 = vsyncpa [#allocation3], 1 }
 0x272   :  { %608 = vsyncpa [#allocation3 + $0x1], 1 }
 0x273   :  { %609 = vsyncpa [#allocation6], 1 }
 0x274   :  { %610 = vsyncpa [#allocation4], 1 }
 0x275   :  { %612 = vsyncpa [#allocation4 + $0x1], 1 }
 0x276   :  { %613 = vsyncpa [#allocation10], 1 }
 0x277   :  { %615 = vsyncpa [#allocation10 + $0x1], 1 }

</bundles_post_ra>
